<compile_context>
chip_gen: v6e
topology: v6e:2x2x1
jax: 0.10.0
libtpu: 0.0.40
codegen_flags: <defaults>
</compile_context>

<pallas_src>
import math

import jax
import jax.numpy as jnp
from jax.experimental import pallas as pl
from jax.experimental.pallas import tpu as pltpu

_MIB = 1024 * 1024


# -------------------------------------------------------------------- hardware helpers


def _vmem_limit_bytes() -> int:
    """Per-generation scoped-VMEM limit: ~100 MiB on 128-MiB parts (v5e/v6e),
    48 MiB on the 64-MiB v7x part; conservative 48 MiB if the query fails."""
    cap = None
    try:
        if hasattr(pltpu, "get_tpu_info"):
            cap = getattr(pltpu.get_tpu_info(), "vmem_capacity_bytes", None)
    except Exception:
        cap = None
    if cap is None:
        cap = 64 * _MIB
    return 100 * _MIB if cap >= 100 * _MIB else 48 * _MIB


def _round_up(x: int, m: int) -> int:
    return ((x + m - 1) // m) * m


def _pick_tile_h(h_pad: int, kdim: int, vmem_limit: int) -> int:
    """Lane-aligned hidden tile: a multiple of 128 dividing h_pad.

    Sized so the double-buffered fused-weight slab (~16*tile_h*kdim bytes in bf16)
    stays inside ~55% of the VMEM limit, capped at 512, preferring >= 2 tiles so the
    'parallel' grid axis can shard across v7x's two TensorCores."""
    divisors = [d for d in range(128, h_pad + 1, 128) if h_pad % d == 0]
    budget = int(vmem_limit * 0.55)
    by_vmem = max(128, budget // (16 * max(kdim, 1)))
    cap = min(512, by_vmem)
    multi = [d for d in divisors if h_pad // d >= 2]
    pool = multi if multi else divisors
    fits = [d for d in pool if d <= cap]
    return max(fits) if fits else min(pool)


# ----------------------------------------------------------------------- weight packing

_GATE_PERM = (0, 1, 3, 2)  # PyTorch [i, f, g, o]  ->  kernel [i, f, o, g]


def _regroup_gate_cols(w_t, h, h_pad, tile_h):
    """(K, 4H) columns [i|f|g|o] -> (K, 4*h_pad) columns grouped as
    [hidden-tile t][gate i,f,o,g][within-tile j] (H zero-padded to h_pad)."""
    k = w_t.shape[0]
    nt = h_pad // tile_h
    w4 = w_t.reshape(k, 4, h)
    w4 = jnp.pad(w4, ((0, 0), (0, 0), (0, h_pad - h)))
    w4 = jnp.take(w4, jnp.array(_GATE_PERM), axis=1)
    return w4.reshape(k, 4, nt, tile_h).transpose(0, 2, 1, 3).reshape(k, 4 * h_pad)


def _pack_fused_weight(w_ih, w_hh, h_pad, tile_h):
    """PyTorch (4H, I)/(4H, H) gate-row-blocked weights -> fused bf16
    (I + h_pad, 4*h_pad) weight for the x||h matmul, columns gate-tile blocked."""
    four_h, _ = w_ih.shape
    h = four_h // 4
    w = jnp.concatenate([jnp.transpose(w_ih), jnp.transpose(w_hh)], axis=0)  # (I+H, 4H)
    w = _regroup_gate_cols(w, h, h_pad, tile_h)
    w = jnp.pad(w, ((0, h_pad - h), (0, 0)))  # pad the h rows too (padded h entries are 0)
    return w.astype(jnp.bfloat16)


def _pack_bias(b_ih, b_hh, h_pad, tile_h):
    """(4H,) + (4H,) -> (1, 4*h_pad) f32 combined bias, same column layout."""
    four_h = b_ih.shape[0]
    h = four_h // 4
    nt = h_pad // tile_h
    b = (b_ih + b_hh).astype(jnp.float32).reshape(4, h)
    b = jnp.pad(b, ((0, 0), (0, h_pad - h)))
    b = jnp.take(b, jnp.array(_GATE_PERM), axis=0)
    return b.reshape(4, nt, tile_h).transpose(1, 0, 2).reshape(1, 4 * h_pad)


# ----------------------------------------------------------------- single-step kernel


def _lstm_cell_kernel(xh_ref, c_ref, w_ref, b_ref, h_out_ref):
    """One LSTM step for one hidden tile.

    xh_ref : (B, I+Hp)      bf16 x||h (same block every grid step -> fetched once)
    c_ref  : (B, th)        f32  previous cell state, this hidden tile
    w_ref  : (I+Hp, 4*th)   bf16 fused [W_ih^T ; W_hh^T] slab, columns [i|f|o|g]
    b_ref  : (1, 4*th)      f32  combined bias (b_ih + b_hh), same layout
    h_out  : (B, th)        new hidden state tile
    """
    th = h_out_ref.shape[1]
    gates = (jnp.dot(xh_ref[...], w_ref[...], preferred_element_type=jnp.float32)
             + b_ref[...])
    sig = jax.nn.sigmoid(gates[:, : 3 * th])           # one launch for i, f, o
    i_g = sig[:, 0 * th:1 * th]
    f_g = sig[:, 1 * th:2 * th]
    o_g = sig[:, 2 * th:3 * th]
    g_g = jnp.tanh(gates[:, 3 * th:])
    c_new = f_g * c_ref[...] + i_g * g_g                # f32; never written to HBM (dead)
    h_out_ref[...] = (o_g * jnp.tanh(c_new)).astype(h_out_ref.dtype)


def lstm_cell_pallas(xh, c, w_packed, b_packed, *, tile_h, vmem_limit, out_dtype):
    """xh: (B, I+Hp) bf16; c: (B, Hp) f32; packed weights/bias from _pack_*.
    Returns only h_new (B, Hp): the module never consumes c_new."""
    B, K = xh.shape
    Hp = c.shape[1]
    nt = Hp // tile_h

    grid_spec = pltpu.PrefetchScalarGridSpec(
        num_scalar_prefetch=0,
        grid=(nt,),
        in_specs=[
            pl.BlockSpec((B, K), lambda t: (0, 0)),             # x||h   (fetched once)
            pl.BlockSpec((B, tile_h), lambda t: (0, t)),        # c tile
            pl.BlockSpec((K, 4 * tile_h), lambda t: (0, t)),    # fused weight slab
            pl.BlockSpec((1, 4 * tile_h), lambda t: (0, t)),    # bias slab
        ],
        out_specs=pl.BlockSpec((B, tile_h), lambda t: (0, t)),
    )
    return pl.pallas_call(
        _lstm_cell_kernel,
        out_shape=jax.ShapeDtypeStruct((B, Hp), out_dtype),
        grid_spec=grid_spec,
        compiler_params=pltpu.CompilerParams(
            dimension_semantics=("parallel",),          # hidden tiles are independent
            vmem_limit_bytes=vmem_limit,
        ),
    )(xh, c, w_packed, b_packed)


# ------------------------------------------------------- decode-loop (sequence) kernel


def _lstm_seq_kernel(x_ref, h0_ref, c0_ref, wih_ref, whh_ref, b_ref,
                     out_ref, c_out_ref, h_sc, c_sc):
    """One time step; weights stay VMEM-resident (their index_maps ignore t).

    x_ref   : (1, B, I)   bf16 input at step t
    h0_ref  : (B, Hp)     bf16 initial hidden state     (fetched once)
    c0_ref  : (B, Hp)     f32  initial cell state        (fetched once)
    wih_ref : (I, 4*Hp)   bf16 W_ih^T, columns [i|f|o|g] (resident all steps)
    whh_ref : (Hp, 4*Hp)  bf16 W_hh^T, columns [i|f|o|g] (resident all steps)
    b_ref   : (1, 4*Hp)   f32  combined bias             (resident all steps)
    out_ref : (1, B, Hp)  hidden state at step t
    c_out   : (B, Hp)     final cell state
    h_sc/c_sc: (B, Hp) bf16 / f32 recurrent state carried across grid steps.
    """
    hp = h_sc.shape[1]

    @pl.when(pl.program_id(0) == 0)
    def _():
        h_sc[...] = h0_ref[...]
        c_sc[...] = c0_ref[...]

    gates = (jnp.dot(x_ref[0], wih_ref[...], preferred_element_type=jnp.float32)
             + jnp.dot(h_sc[...], whh_ref[...], preferred_element_type=jnp.float32)
             + b_ref[...])
    sig = jax.nn.sigmoid(gates[:, : 3 * hp])
    i_g = sig[:, 0 * hp:1 * hp]
    f_g = sig[:, 1 * hp:2 * hp]
    o_g = sig[:, 2 * hp:3 * hp]
    g_g = jnp.tanh(gates[:, 3 * hp:])
    c_new = f_g * c_sc[...] + i_g * g_g
    h_new = o_g * jnp.tanh(c_new)

    c_sc[...] = c_new
    h_sc[...] = h_new.astype(h_sc.dtype)
    out_ref[0] = h_new.astype(out_ref.dtype)
    c_out_ref[...] = c_new


def lstm_sequence_pallas(xs, h0, c0, w_ih_seq, w_hh_seq, b_seq, *, vmem_limit, out_dtype):
    """xs: (T, B, I) bf16; h0: (B, Hp) bf16; c0: (B, Hp) f32.
    Weights fetched once, reused across all T grid steps."""
    T, B, I = xs.shape
    Hp = h0.shape[1]

    grid_spec = pltpu.PrefetchScalarGridSpec(
        num_scalar_prefetch=0,
        grid=(T,),
        in_specs=[
            pl.BlockSpec((1, B, I), lambda t: (t, 0, 0)),       # x_t
            pl.BlockSpec((B, Hp), lambda t: (0, 0)),            # h0 (once)
            pl.BlockSpec((B, Hp), lambda t: (0, 0)),            # c0 (once)
            pl.BlockSpec((I, 4 * Hp), lambda t: (0, 0)),        # W_ih^T (resident)
            pl.BlockSpec((Hp, 4 * Hp), lambda t: (0, 0)),       # W_hh^T (resident)
            pl.BlockSpec((1, 4 * Hp), lambda t: (0, 0)),        # bias   (resident)
        ],
        out_specs=[
            pl.BlockSpec((1, B, Hp), lambda t: (t, 0, 0)),      # h_t
            pl.BlockSpec((B, Hp), lambda t: (0, 0)),            # c_T
        ],
        scratch_shapes=[
            pltpu.VMEM((B, Hp), jnp.bfloat16),                  # h carry
            pltpu.VMEM((B, Hp), jnp.float32),                   # c carry
        ],
    )
    return pl.pallas_call(
        _lstm_seq_kernel,
        out_shape=(jax.ShapeDtypeStruct((T, B, Hp), out_dtype),
                   jax.ShapeDtypeStruct((B, Hp), jnp.float32)),
        grid_spec=grid_spec,
        compiler_params=pltpu.CompilerParams(
            dimension_semantics=("arbitrary",),         # recurrence over time
            vmem_limit_bytes=vmem_limit,
        ),
    )(xs, h0, c0, w_ih_seq, w_hh_seq, b_seq)


# ---------------------------------------------------------------------------- module


class LSTMPallas:
    """JAX/Pallas port of rnn_model/LSTMcell.py::LSTM (attention=False path).

    NOTE: with small batch (B~8) the step kernel is weight-DMA bound; callers with many
    beams/sequences should merge them into one call so the MXU M-dim is better used."""

    def __init__(self, input_size, hidden_size, bias=True, key=None):
        self.input_size = input_size
        self.hidden_size = hidden_size
        self.bias = bias
        if key is None:
            key = jax.random.PRNGKey(0)
        std = 1.0 / math.sqrt(hidden_size)
        k1, k2, k3, k4 = jax.random.split(key, 4)

        # Canonical f32 parameters, PyTorch nn.LSTM layout (num_layers=1):
        #   weight_ih_l0 (4H, I), weight_hh_l0 (4H, H), gate rows blocked [i,f,g,o].
        self.w_ih = jax.random.uniform(k1, (4 * hidden_size, input_size),
                                       jnp.float32, -std, std)
        self.w_hh = jax.random.uniform(k2, (4 * hidden_size, hidden_size),
                                       jnp.float32, -std, std)
        if bias:
            self.b_ih = jax.random.uniform(k3, (4 * hidden_size,), jnp.float32, -std, std)
            self.b_hh = jax.random.uniform(k4, (4 * hidden_size,), jnp.float32, -std, std)
        else:
            self.b_ih = jnp.zeros((4 * hidden_size,), jnp.float32)
            self.b_hh = jnp.zeros((4 * hidden_size,), jnp.float32)

        # Kernel-ready copies built ONCE: hidden padded to a lane multiple, gates
        # regrouped [i|f|o|g], W_ih^T / W_hh^T fused; weights bf16, bias f32.
        self.h_pad = _round_up(hidden_size, 128)
        self.vmem_limit = _vmem_limit_bytes()
        kdim = input_size + self.h_pad
        self.tile_h = _pick_tile_h(self.h_pad, kdim, self.vmem_limit)
        self.w_packed = _pack_fused_weight(self.w_ih, self.w_hh, self.h_pad, self.tile_h)
        self.b_packed = _pack_bias(self.b_ih, self.b_hh, self.h_pad, self.tile_h)

        # Decode-loop (sequence) layout: one gate block over the whole padded hidden so
        # the VMEM-resident kernel can slice i/f/o/g with full-width lane groups.
        if self.tile_h == self.h_pad:
            w_seq = self.w_packed
            self.b_seq = self.b_packed
        else:
            w_seq = _pack_fused_weight(self.w_ih, self.w_hh, self.h_pad, self.h_pad)
            self.b_seq = _pack_bias(self.b_ih, self.b_hh, self.h_pad, self.h_pad)
        self.w_ih_seq = w_seq[:input_size]        # (I,  4*Hp) bf16
        self.w_hh_seq = w_seq[input_size:]        # (Hp, 4*Hp) bf16

    # ------------------------------------------------------------------ helpers

    def _pad_state(self, h, c):
        pad = self.h_pad - self.hidden_size
        if pad:
            h = jnp.pad(h, ((0, 0), (0, pad)))
            c = jnp.pad(c, ((0, 0), (0, pad)))
        return h, c

    # ------------------------------------------------------------------ single step

    def step(self, x, h, c):
        """One LSTM step. x: (B, I); h, c: (B, H). Returns h_new (B, H) only — the
        module never consumes c_new, so its HBM write is elided."""
        h_p, c_p = self._pad_state(h, c)
        xh = jnp.concatenate([x, h_p], axis=1).astype(jnp.bfloat16)   # one cast, outside
        h_new = lstm_cell_pallas(
            xh, c_p, self.w_packed, self.b_packed,
            tile_h=self.tile_h, vmem_limit=self.vmem_limit, out_dtype=x.dtype)
        return h_new[:, :self.hidden_size]

    def __call__(self, x, state):
        """x: (batch, input_size); state = (h0, c0), each (1, batch, hidden)."""
        h0, c0 = state
        h_new = self.step(x, h0[0], c0[0])
        # PyTorch module returns (output.squeeze(0), state) -- the OLD state.
        return h_new, state

    # ------------------------------------------------------------------ decode loop

    def run_sequence(self, xs, state):
        """xs: (T, B, I); state = (h0, c0) each (1, B, H).  Runs T recurrent steps with
        the fused weights DMA'd once and kept VMEM-resident (the big lever vs. calling
        __call__ per step).  Returns (outputs (T, B, H), (h_T, c_T))."""
        resident = (self.w_ih_seq.size + self.w_hh_seq.size) * 2       # bf16 bytes
        if resident > int(self.vmem_limit * 0.5):
            # TODO(synk): for very large I+H the resident weights exceed VMEM; a
            #             hidden-tiled sequence kernel (cross-tile h exchange) is needed.
            raise ValueError("hidden/input too large for VMEM-resident sequence kernel")
        h0, c0 = state
        h_p, c_p = self._pad_state(h0[0], c0[0])
        outs, c_t = lstm_sequence_pallas(
            xs.astype(jnp.bfloat16), h_p.astype(jnp.bfloat16), c_p,
            self.w_ih_seq, self.w_hh_seq, self.b_seq,
            vmem_limit=self.vmem_limit, out_dtype=xs.dtype)
        H = self.hidden_size
        return outs[:, :, :H], (outs[-1, :, :H], c_t[:, :H])


# ----------------------------------------------------------------------------- tests


def _reference_step_bf16(x, h, c, w_ih, w_hh, b_ih, b_hh):
    """Same numerics as the kernel: fused bf16 matmul, f32 accumulation & gate math."""
    xh = jnp.concatenate([x, h], axis=1).astype(jnp.bfloat16)
    w = jnp.concatenate([w_ih.T, w_hh.T], axis=0).astype(jnp.bfloat16)
    gates = jnp.dot(xh, w, preferred_element_type=jnp.float32) + (b_ih + b_hh)
    H = h.shape[1]
    i = jax.nn.sigmoid(gates[:, :H])
    f = jax.nn.sigmoid(gates[:, H:2 * H])
    g = jnp.tanh(gates[:, 2 * H:3 * H])
    o = jax.nn.sigmoid(gates[:, 3 * H:])
    c_new = f * c + i * g
    return o * jnp.tanh(c_new), c_new


def _reference_step_f32(x, h, c, w_ih, w_hh, b_ih, b_hh):
    gates = x @ w_ih.T + b_ih + h @ w_hh.T + b_hh
    H = h.shape[1]
    i = jax.nn.sigmoid(gates[:, :H])
    f = jax.nn.sigmoid(gates[:, H:2 * H])
    g = jnp.tanh(gates[:, 2 * H:3 * H])
    o = jax.nn.sigmoid(gates[:, 3 * H:])
    c_new = f * c + i * g
    return o * jnp.tanh(c_new), c_new


def _run_step_case(batch, input_size, hidden_size, seed):
    key = jax.random.PRNGKey(seed)
    k_x, k_h, k_c, k_p = jax.random.split(key, 4)
    x = jax.random.normal(k_x, (batch, input_size), jnp.float32)
    h0 = jax.random.normal(k_h, (1, batch, hidden_size), jnp.float32)
    c0 = jax.random.normal(k_c, (1, batch, hidden_size), jnp.float32)

    model = LSTMPallas(input_size, hidden_size, bias=True, key=k_p)
    out, state = model(x, (h0, c0))
    out = jax.block_until_ready(out)

    ref_bf16, _ = _reference_step_bf16(x, h0[0], c0[0], model.w_ih, model.w_hh,
                                       model.b_ih, model.b_hh)
    ref_f32, _ = _reference_step_f32(x, h0[0], c0[0], model.w_ih, model.w_hh,
                                     model.b_ih, model.b_hh)

    assert out.shape == (batch, hidden_size)
    assert jnp.allclose(out, ref_bf16, atol=2e-3, rtol=2e-3), "mismatch vs bf16 reference"
    assert jnp.allclose(out, ref_f32, atol=5e-2, rtol=5e-2), "mismatch vs f32 reference"
    assert state[0] is h0 and state[1] is c0       # module returns the *old* state


def _run_seq_case(batch, input_size, hidden_size, seq_len, seed):
    key = jax.random.PRNGKey(seed)
    k_x, k_h, k_c, k_p = jax.random.split(key, 4)
    xs = jax.random.normal(k_x, (seq_len, batch, input_size), jnp.float32)
    h0 = jax.random.normal(k_h, (1, batch, hidden_size), jnp.float32)
    c0 = jax.random.normal(k_c, (1, batch, hidden_size), jnp.float32)

    model = LSTMPallas(input_size, hidden_size, bias=True, key=k_p)
    outs, (h_t, c_t) = model.run_sequence(xs, (h0, c0))
    outs = jax.block_until_ready(outs)

    h_ref, c_ref = h0[0], c0[0]
    for t in range(seq_len):
        h_ref, c_ref = _reference_step_bf16(xs[t], h_ref, c_ref, model.w_ih, model.w_hh,
                                            model.b_ih, model.b_hh)
        assert jnp.allclose(outs[t], h_ref, atol=1e-2, rtol=1e-2), f"seq mismatch @t={t}"
    assert jnp.allclose(h_t, h_ref, atol=1e-2, rtol=1e-2), "final h mismatch"
    assert jnp.allclose(c_t, c_ref, atol=2e-2, rtol=2e-2), "final c mismatch"


if __name__ == "__main__":
    # Unaligned hidden (H=32 -> padded to 128): single-tile grid, lane-dense stores.
    _run_step_case(batch=8, input_size=16, hidden_size=32, seed=0)
    # Lane-aligned hidden: 2 hidden tiles -> the 'parallel' axis can use both v7x TCs.
    _run_step_case(batch=8, input_size=128, hidden_size=256, seed=1)
    # Decode-loop path: fused weights fetched once, VMEM-resident across 6 steps.
    _run_seq_case(batch=8, input_size=128, hidden_size=256, seq_len=6, seed=2)
    print("KERNEL_OK")
</pallas_src>

<mosaic_0001>
module attributes {stable_mosaic.version = 11 : i64} {
  func.func @_lstm_cell_kernel(%arg0: i32, %arg1: memref<8x144xbf16, #tpu.memory_space<vmem>>, %arg2: memref<8x128xf32, #tpu.memory_space<vmem>>, %arg3: memref<144x512xbf16, #tpu.memory_space<vmem>>, %arg4: memref<1x512xf32, #tpu.memory_space<vmem>>, %arg5: memref<8x128xf32, #tpu.memory_space<vmem>>) attributes {dimension_semantics = [#tpu.dimension_semantics<parallel>], iteration_bounds = array<i64: 1>, scalar_prefetch = 0 : i64, scratch_operands = 0 : i64, tpu.core_type = #tpu.core_type<tc>, window_params = [{pipeline_mode = #tpu.pipeline_mode<synchronous>, transform_indices = @transform_0, window_bounds = array<i64: 8, 144>}, {transform_indices = @transform_1, window_bounds = array<i64: 8, 128>}, {transform_indices = @transform_2, window_bounds = array<i64: 144, 512>}, {transform_indices = @transform_3, window_bounds = array<i64: 1, 512>}, {transform_indices = @transform_4, window_bounds = array<i64: 8, 128>}]} {
    %c0 = arith.constant 0 : index
    %c0_0 = arith.constant 0 : index
    %0 = vector.load %arg1[%c0, %c0_0] : memref<8x144xbf16, #tpu.memory_space<vmem>>, vector<8x144xbf16>
    %c0_1 = arith.constant 0 : index
    %c0_2 = arith.constant 0 : index
    %1 = vector.load %arg3[%c0_1, %c0_2] : memref<144x512xbf16, #tpu.memory_space<vmem>>, vector<144x512xbf16>
    %cst = arith.constant dense<0.000000e+00> : vector<8x512xf32>
    %2 = tpu.matmul %0, %1, %cst {dimension_numbers = #tpu.dot_dimension_numbers<[1], [0], [0], [1], [0, 0, 1, 1], [], []>} : vector<8x144xbf16>, vector<144x512xbf16>, vector<8x512xf32> -> vector<8x512xf32>
    %c0_3 = arith.constant 0 : index
    %c0_4 = arith.constant 0 : index
    %3 = vector.load %arg4[%c0_3, %c0_4] : memref<1x512xf32, #tpu.memory_space<vmem>>, vector<1x512xf32>
    %4 = vector.broadcast %3 : vector<1x512xf32> to vector<8x512xf32>
    %5 = arith.addf %2, %4 : vector<8x512xf32>
    %6 = vector.extract_strided_slice %5 {offsets = [0, 0], sizes = [8, 384], strides = [1, 1]} : vector<8x512xf32> to vector<8x384xf32>
    %7 = arith.negf %6 : vector<8x384xf32>
    %8 = math.exp %7 : vector<8x384xf32>
    %cst_5 = arith.constant 1.000000e+00 : f32
    %9 = vector.broadcast %cst_5 : f32 to vector<8x384xf32>
    %10 = arith.addf %9, %8 : vector<8x384xf32>
    %11 = arith.divf %9, %10 : vector<8x384xf32>
    %12 = vector.extract_strided_slice %11 {offsets = [0, 0], sizes = [8, 128], strides = [1, 1]} : vector<8x384xf32> to vector<8x128xf32>
    %13 = vector.extract_strided_slice %11 {offsets = [0, 128], sizes = [8, 128], strides = [1, 1]} : vector<8x384xf32> to vector<8x128xf32>
    %14 = vector.extract_strided_slice %11 {offsets = [0, 256], sizes = [8, 128], strides = [1, 1]} : vector<8x384xf32> to vector<8x128xf32>
    %15 = vector.extract_strided_slice %5 {offsets = [0, 384], sizes = [8, 128], strides = [1, 1]} : vector<8x512xf32> to vector<8x128xf32>
    %16 = math.tanh %15 : vector<8x128xf32>
    %c0_6 = arith.constant 0 : index
    %c0_7 = arith.constant 0 : index
    %17 = vector.load %arg2[%c0_6, %c0_7] : memref<8x128xf32, #tpu.memory_space<vmem>>, vector<8x128xf32>
    %18 = arith.mulf %13, %17 : vector<8x128xf32>
    %19 = arith.mulf %12, %16 : vector<8x128xf32>
    %20 = arith.addf %18, %19 : vector<8x128xf32>
    %21 = math.tanh %20 : vector<8x128xf32>
    %22 = arith.mulf %14, %21 : vector<8x128xf32>
    %c0_8 = arith.constant 0 : index
    %c0_9 = arith.constant 0 : index
    %23 = vector.load %arg5[%c0_8, %c0_9] : memref<8x128xf32, #tpu.memory_space<vmem>>, vector<8x128xf32>
    tpu.vector_store %arg5[%c0_8, %c0_9], %22 {strides = array<i32>} : memref<8x128xf32, #tpu.memory_space<vmem>>, vector<8x128xf32>,
    return
  }
  func.func @transform_0(%arg0: i32) -> (i32, i32) {
    %c0_i32 = arith.constant 0 : i32
    %c0_i32_0 = arith.constant 0 : i32
    %c0_i32_1 = arith.constant 0 : i32
    return %c0_i32, %c0_i32_0 : i32, i32
  }
  func.func @transform_1(%arg0: i32) -> (i32, i32) {
    %c0_i32 = arith.constant 0 : i32
    %c0_i32_0 = arith.constant 0 : i32
    return %c0_i32, %arg0 : i32, i32
  }
  func.func @transform_2(%arg0: i32) -> (i32, i32) {
    %c0_i32 = arith.constant 0 : i32
    %c0_i32_0 = arith.constant 0 : i32
    return %c0_i32, %arg0 : i32, i32
  }
  func.func @transform_3(%arg0: i32) -> (i32, i32) {
    %c0_i32 = arith.constant 0 : i32
    %c0_i32_0 = arith.constant 0 : i32
    return %c0_i32, %arg0 : i32, i32
  }
  func.func @transform_4(%arg0: i32) -> (i32, i32) {
    %c0_i32 = arith.constant 0 : i32
    %c0_i32_0 = arith.constant 0 : i32
    return %c0_i32, %arg0 : i32, i32
  }
}

</mosaic_0001>

<bundles_post_ra>
// kernel: tpu_custom_call.1
= control target key start
LH: loop header
LB: loop body
LE: loop exit
PB: predicated region body
PF: predicated region fallthrough
CT: control target
= control target key end

     0   :  { %9 = vsyncpa [#allocation3], 0  ;;  %s682_s0 = inlined_call_operand.hbm [shape: bf16[8,144], index: 0, kind: input, shape index: {}]   ;;  %s683_s1 = inlined_call_operand.hbm [shape: f32[8,128], index: 1, kind: input, shape index: {}]   ;;  %s684_s2 = inlined_call_operand.hbm [shape: bf16[144,512], index: 2, kind: input, shape index: {}]   ;;  %s685_s3 = inlined_call_operand.vmem [shape: f32[1,512], index: 3, kind: input, shape index: {}]   ;;  %s686_s4 = inlined_call_operand.hbm [shape: f32[8,128], index: 4, kind: output, shape index: {}]  }
   0x1   :  { %10 = vsyncpa [#allocation6], 0 }
   0x2   :  { %11 = vsyncpa [#allocation4], 0  ;;  %s636_s15 = smov [#allocation5]   ;;  %s637_s17 = smov [#allocation2]  }
   0x3   :  { %s28_s16 = sshll.u32 %s636_s15, 4  ;;  %s18_s18 = sshll.u32 %s637_s17, 4  ;;  %s29_s16 = int_to_ptr.vmem [resolvable:$true] %s28_s16  ;;  %s19_s18 = int_to_ptr.vmem [resolvable:$true] %s18_s18 }
   0x4   :  { %s558_s19 = scalar_lea.vmem %s29_s16, 128  ;;  %p563_p1 = scmp.lt.s32.totalorder %s29_s16, %s29_s16 }
   0x5   :  { %p559_p0 = scmp.ne.s32.totalorder %s29_s16, %s558_s19  ;;  %p564_p2 = scmp.lt.s32.totalorder %s558_s19, %s558_s19 }
   0x7   :  { %p565_p3 = por %p564_p2, %p563_p1 }
   0x9   :  { %p566_p4 = pnand %p565_p3, %p559_p0 }
   0xb   :  { %569 = shalt.err (!%p566_p4)
}
   0xc   :  { %31 = dma.hbm_to_vmem [thread:$0]  %s683_s1, 128, %s29_s16, [#allocation6]  }
   0xd   :  { %s578_s22 = scalar_lea.vmem %s19_s18, 128  ;;  %p583_p6 = scmp.lt.s32.totalorder %s19_s18, %s19_s18 }
   0xe   :  { %p579_p5 = scmp.ne.s32.totalorder %s19_s18, %s578_s22  ;;  %p584_p7 = scmp.lt.s32.totalorder %s578_s22, %s578_s22 }
  0x10   :  { %p585_p8 = por %p584_p7, %p583_p6 }
  0x12   :  { %p586_p9 = pnand %p585_p8, %p579_p5 }
  0x14   :  { %589 = shalt.err (!%p586_p9)
}
  0x15   :  { %21 = dma.hbm_to_vmem [thread:$0]  %s682_s0, 128, %s19_s18, [#allocation3]  }
  0x16   :  { %s638_s25 = smov [#allocation7]  }
  0x17   :  { %s37_s26 = sshll.u32 %s638_s25, 4  ;;  %s38_s26 = int_to_ptr.vmem [resolvable:$true] %s37_s26 }
  0x18   :  { %s598_s27 = scalar_lea.vmem %s38_s26, 4608  ;;  %p603_p11 = scmp.lt.s32.totalorder %s38_s26, %s38_s26 }
  0x19   :  { %p599_p10 = scmp.ne.s32.totalorder %s38_s26, %s598_s27  ;;  %p604_p12 = scmp.lt.s32.totalorder %s598_s27, %s598_s27 }
  0x1b   :  { %p605_p13 = por %p604_p12, %p603_p11 }
  0x1d   :  { %p606_p0 = pnand %p605_p13, %p599_p10 }
  0x1f   :  { %609 = shalt.err (!%p606_p0)
}
  0x20   :  { %s639_s1 = smov 256   ;;  %s640_s28 = smov 16  }
  0x21   :  { %43 = dma.hbm_to_vmem [thread:$0]  %s684_s2, 4608, %s38_s26, [#allocation6], %s639_s1, %s639_s1, %s640_s28  }
  0x22   :  { %630 = dma.done.wait [#allocation3], 128  }
  0x23   :  { %631 = vsyncadd [#allocation3], 4294967168 }
  0x24   :  { %632 = dma.done.wait [#allocation6], 4736  }
  0x25   :  { %633 = vsyncadd [#allocation6], 4294962560  ;;  %v478_v0 = vld [vmem:[#allocation7 + $0xe4] ss:$16 sps:$4 sm:$0xff]   ;;  %v480_v1 = vld [vmem:[#allocation7 + $0xe0] ss:$16 sps:$4 sm:$0xff]   ;;  %v95_v39 = vlaneseq }
  0x26   :  { %305 = vmatprep.subr.bf16.mxu0 %v478_v0  ;;  %v481_v2 = vld [vmem:[#allocation7 + $0xc4] ss:$16 sps:$4 sm:$0xff]   ;;  %v483_v3 = vld [vmem:[#allocation7 + $0xc0] ss:$16 sps:$4 sm:$0xff]   ;;  %v489_v5 = vld [vmem:[#allocation7 + $0xec] ss:$16 sps:$4 sm:$0xff]  }
  0x27   :  { %306 = vmatpush1.bf16.msra.mxu0 %v480_v1  ;;  %v484_v4 = vld [vmem:[#allocation7 + $0xa4] ss:$16 sps:$4 sm:$0xff]   ;;  %v492_v6 = vld [vmem:[#allocation7 + $0xe8] ss:$16 sps:$4 sm:$0xff]   ;;  %v486_v7 = vld [vmem:[#allocation7 + $0xa0] ss:$16 sps:$4 sm:$0xff]   ;;  %346 = vmatprep.subr.bf16.mxu1 %v489_v5 }
  0x28   :  { %307 = vmatprep.subr.bf16.mxu0 %v481_v2  ;;  %v487_v8 = vld [vmem:[#allocation7 + $0x84] ss:$16 sps:$4 sm:$0xff]   ;;  %347 = vmatpush1.bf16.msra.mxu1 %v492_v6  ;;  %v495_v9 = vld [vmem:[#allocation7 + $0xcc] ss:$16 sps:$4 sm:$0xff]   ;;  %v498_v10 = vld [vmem:[#allocation7 + $0xc8] ss:$16 sps:$4 sm:$0xff]  }
  0x29   :  { %348 = vmatprep.subr.bf16.mxu1 %v495_v9  ;;  %v491_v11 = vld [vmem:[#allocation7 + $0x80] ss:$16 sps:$4 sm:$0xff]   ;;  %v493_v12 = vld [vmem:[#allocation7 + $0x64] ss:$16 sps:$4 sm:$0xff]   ;;  %v501_v13 = vld [vmem:[#allocation7 + $0xac] ss:$16 sps:$4 sm:$0xff]  }
  0x2a   :  { %v504_v14 = vld [vmem:[#allocation7 + $0xa8] ss:$16 sps:$4 sm:$0xff]   ;;  %v507_v15 = vld [vmem:[#allocation7 + $0x8c] ss:$16 sps:$4 sm:$0xff]   ;;  %v497_v16 = vld [vmem:[#allocation7 + $0x60] ss:$16 sps:$4 sm:$0xff]  }
  0x2b   :  { %308 = vmatpush1.bf16.msra.mxu0 %v483_v3  ;;  %v499_v17 = vld [vmem:[#allocation7 + $0x44] ss:$16 sps:$4 sm:$0xff]   ;;  %v510_v18 = vld [vmem:[#allocation7 + $0x88] ss:$16 sps:$4 sm:$0xff]   ;;  %v513_v19 = vld [vmem:[#allocation7 + $0x6c] ss:$16 sps:$4 sm:$0xff]  }
  0x2c   :  { %309 = vmatprep.subr.bf16.mxu0 %v484_v4  ;;  %349 = vmatpush1.bf16.msra.mxu1 %v498_v10  ;;  %v503_v20 = vld [vmem:[#allocation7 + $0x40] ss:$16 sps:$4 sm:$0xff]   ;;  %v505_v21 = vld [vmem:[#allocation7 + $0x24] ss:$16 sps:$4 sm:$0xff]   ;;  %v516_v22 = vld [vmem:[#allocation7 + $0x68] ss:$16 sps:$4 sm:$0xff]  }
  0x2d   :  { %350 = vmatprep.subr.bf16.mxu1 %v501_v13  ;;  %v56_v23 = vld [vmem:[#allocation2] sm:$0xff]  ;;  %vm301_vm0 = vcmask 130048   ;;  %v519_v24 = vld [vmem:[#allocation7 + $0x4c] ss:$16 sps:$4 sm:$0xff]   ;;  %v522_v28 = vld [vmem:[#allocation7 + $0x48] ss:$16 sps:$4 sm:$0xff]  }
  0x2e   :  { %v430_v25 = vcombine.high %v56_v23, %v56_v23  ;;  %v509_v26 = vld [vmem:[#allocation7 + $0x20] ss:$16 sps:$4 sm:$0xff]   ;;  %v511_v27 = vld [vmem:[#allocation7 + $0x4] ss:$16 sps:$4 sm:$0xff]   ;;  %v525_v29 = vld [vmem:[#allocation7 + $0x2c] ss:$16 sps:$4 sm:$0xff]   ;;  %v429_v37 = vcombine.low %v56_v23, %v56_v23 }
  0x2f   :  { %310 = vmatpush1.bf16.msra.mxu0 %v486_v7  ;;  %v515_v30 = vld [vmem:[#allocation7] ss:$16 sps:$4 sm:$0xff]   ;;  %v517_v31 = vld [vmem:[#allocation7 + $0x104] ss:$16 sps:$4 sm:$0xff]   ;;  %v527_v32 = vld [vmem:[#allocation7 + $0x28] ss:$16 sps:$4 sm:$0xff]  }
  0x30   :  { %311 = vmatprep.subr.bf16.mxu0 %v487_v8  ;;  %351 = vmatpush1.bf16.msra.mxu1 %v504_v14  ;;  %v528_v33 = vld [vmem:[#allocation7 + $0xc] ss:$16 sps:$4 sm:$0xff]   ;;  %v521_v34 = vld [vmem:[#allocation7 + $0x100] ss:$16 sps:$4 sm:$0xff]   ;;  %v530_v35 = vld [vmem:[#allocation7 + $0x8] ss:$16 sps:$4 sm:$0xff]  }
  0x31   :  { %352 = vmatprep.subr.bf16.mxu1 %v507_v15  ;;  %467 = vmatprep.mubr.msk.bf16.mxu0 %vm301_vm0, %v430_v25  ;;  %v531_v36 = vld [vmem:[#allocation7 + $0x10c] ss:$16 sps:$4 sm:$0xff]   ;;  %v533_v38 = vld [vmem:[#allocation7 + $0x108] ss:$16 sps:$4 sm:$0xff]   ;;  %v96_v40 = vshrl.u32 %v95_v39, 7 }
  0x32   :  { %468 = vmatprep.mubr.msk.bf16.mxu1 %vm301_vm0, %v430_v25  ;;  %v93_v42 = vld [vmem:[%s685_s3] sm:$0xf]  ;;  %v406_v8 = vld [vmem:[#allocation5] sm:$0xff]  ;;  %s641_s3 = smov [#allocation8]  }
  0x33   :  { %312 = vmatpush1.bf16.msra.mxu0 %v491_v11  ;;  %v97_v41 = vsub.s32 0, %v96_v40  ;;  %v101_v43 = vsub.s32 1, %v96_v40  ;;  %v105_v51 = vsub.s32 2, %v96_v40  ;;  %v109_v58 = vsub.s32 3, %v96_v40  ;;  %s419_s5 = sshll.u32 %s641_s3, 4  ;;  %s420_s5 = int_to_ptr.vmem [resolvable:$true] %s419_s5 }
  0x34   :  { %313 = vmatprep.subr.bf16.mxu0 %v493_v12  ;;  %353 = vmatpush1.bf16.msra.mxu1 %v510_v18  ;;  %s610_s6 = scalar_lea.vmem %s420_s5, 128  ;;  %p615_p2 = scmp.lt.s32.totalorder %s420_s5, %s420_s5 }
  0x35   :  { %354 = vmatprep.subr.bf16.mxu1 %v513_v19  ;;  %v98_v44 = vrot.slane %v93_v42, %v97_v41  ;;  %v102_v45 = vrot.slane %v93_v42, %v101_v43  ;;  %v106_v56 = vrot.slane %v93_v42, %v105_v51  ;;  %v110_v62 = vrot.slane %v93_v42, %v109_v58  ;;  %p611_p1 = scmp.ne.s32.totalorder %s420_s5, %s610_s6  ;;  %p616_p3 = scmp.lt.s32.totalorder %s610_s6, %s610_s6 }
  0x37   :  { %314 = vmatpush1.bf16.msra.mxu0 %v497_v16  ;;  %p617_p4 = por %p616_p3, %p615_p2 }
  0x38   :  { %315 = vmatprep.subr.bf16.mxu0 %v499_v17  ;;  %355 = vmatpush1.bf16.msra.mxu1 %v516_v22 }
  0x39   :  { %356 = vmatprep.subr.bf16.mxu1 %v519_v24  ;;  %p618_p5 = pnand %p617_p4, %p611_p1 }
  0x3b   :  { %316 = vmatpush1.bf16.msra.mxu0 %v503_v20 }
  0x3c   :  { %317 = vmatprep.subr.bf16.mxu0 %v505_v21  ;;  %357 = vmatpush1.bf16.msra.mxu1 %v522_v28 }
  0x3d   :  { %358 = vmatprep.subr.bf16.mxu1 %v525_v29 }
  0x3f   :  { %318 = vmatpush1.bf16.msra.mxu0 %v509_v26 }
  0x40   :  { %319 = vmatprep.subr.bf16.mxu0 %v511_v27  ;;  %359 = vmatpush1.bf16.msra.mxu1 %v527_v32 }
  0x41   :  { %360 = vmatprep.subr.bf16.mxu1 %v528_v33 }
  0x43   :  { %320 = vmatpush1.bf16.msra.mxu0 %v515_v30 }
  0x44   :  { %335 = vmatprep.subr.bf16.mxu0 %v517_v31  ;;  %361 = vmatpush1.bf16.msra.mxu1 %v530_v35 }
  0x45   :  { %376 = vmatprep.subr.bf16.mxu1 %v531_v36 }
  0x47   :  { %336 = vmatpush2.bf16.msra.mxu0 %v521_v34 }
  0x48   :  { %377 = vmatpush2.bf16.msra.mxu1 %v533_v38 }
  0x4a   :  { %338 = vmatmul.mubr.bf16.vlgmr.msra.gmra.mxu0 %v429_v37 }
  0x4b   :  { %379 = vmatmul.mubr.bf16.vlgmr.msra.gmra.mxu1 %v429_v37 }
 0x10a   :  { %v339_v46 = vpop.f32.mrf.mxu0 }
 0x10b   :  { %v340_v47 = vadd.f32 %v339_v46, %v98_v44  ;;  %v380_v54 = vpop.f32.mrf.mxu1 }
 0x10c   :  { %v341_v48 = vpop.f32.mrf.mxu0  ;;  %v381_v60 = vadd.f32 %v380_v54, %v106_v56 }
 0x10d   :  { %v469_v49 = vmul.f32 -1.442695, %v340_v47  ;;  %v342_v50 = vadd.f32 %v341_v48, %v102_v45  ;;  %v382_v57 = vpop.f32.mrf.mxu1 }
 0x10e   :  { %v343_v52 = vpop.f32.mrf.mxu0  ;;  %v471_v63 = vmul.f32 -1.442695, %v381_v60  ;;  %v383_v0 = vadd.f32 %v382_v57, %v110_v62 }
 0x10f   :  { %534 = vpow2.f32 %v469_v49  ;;  %v470_v53 = vmul.f32 -1.442695, %v342_v50  ;;  %v384_v59 = vpop.f32.mrf.mxu1 }
 0x110   :  { %v344_v55 = vpop.f32.mrf.mxu0 }
 0x111   :  { %536 = vpow2.f32 %v470_v53  ;;  %v385_v61 = vpop.f32.mrf.mxu1 }
 0x112   :  { %538 = vpow2.f32 %v471_v63 }
 0x113   :  { %540 = vtanh.f32 %v383_v0 }
 0x11c   :  { %v535_v1 = vpop.eup %534 }
 0x11d   :  { %v396_v2 = vadd.f32 1.0, %v535_v1 }
 0x11e   :  { %v537_v3 = vpop.eup %536 }
 0x11f   :  { %542 = vrcp.f32 %v396_v2  ;;  %v397_v4 = vadd.f32 1.0, %v537_v3  ;;  %v539_v5 = vpop.eup %538 }
 0x120   :  { %v541_v6 = vpop.eup %540  ;;  %v398_v10 = vadd.f32 1.0, %v539_v5 }
 0x121   :  { %544 = vrcp.f32 %v397_v4 }
 0x122   :  { %546 = vrcp.f32 %v398_v10 }
 0x12c   :  { %v543_v7 = vpop.eup %542 }
 0x12d   :  { %v408_v12 = vmul.f32 %v543_v7, %v541_v6 }
 0x12e   :  { %v545_v9 = vpop.eup %544 }
 0x12f   :  { %v407_v11 = vmul.f32 %v545_v9, %v406_v8  ;;  %v547_v14 = vpop.eup %546 }
 0x131   :  { %v409_v13 = vadd.f32 %v408_v12, %v407_v11 }
 0x133   :  { %548 = vtanh.f32 %v409_v13 }
 0x140   :  { %v549_v15 = vpop.eup %548 }
 0x141   :  { %v411_v16 = vmul.f32 %v549_v15, %v547_v14 }
 0x143   :  { %412 = vst [vmem:[#allocation8] sm:$0xff] %v411_v16 }
 0x144   :  { %621 = shalt.err (!%p618_p5)
}
 0x145   :  { %422 = dma.vmem_to_hbm [thread:$0]  %s420_s5, 128, %s686_s4, [#allocation4]  }
 0x146   :  { %634 = dma.done.wait [#allocation4], 128  }
 0x147   :  { %635 = vsyncadd [#allocation4], 4294967168 }
 0x148   :  { %426 = vsyncpa [#allocation3], 1 }
 0x149   :  { %427 = vsyncpa [#allocation6], 1 }
 0x14a   :  { %428 = vsyncpa [#allocation4], 1 }

</bundles_post_ra>
